<compile_context>
chip_gen: v6e
topology: v6e:2x2x1
jax: 0.10.0
libtpu: 0.0.40
codegen_flags: <defaults>
</compile_context>

<pallas_src>
import functools

import jax
import jax.numpy as jnp
from jax import lax
from jax.experimental import pallas as pl
from jax.experimental.pallas import tpu as pltpu


def _round_up(x, m):
    return ((x + m - 1) // m) * m


def _fdal_partial_kernel(feat_ref, idx_ref, bsel_ref, w_ref, out_ref, acc_ref,
                         *, tn, n_valid, apply_phistar):
    c = pl.program_id(0)          # core slice (parallel)
    i = pl.program_id(1)          # row-tile loop (arbitrary / reduction)
    tpc = pl.num_programs(1)

    @pl.when(i == 0)
    def _():
        acc_ref[...] = jnp.zeros_like(acc_ref)

    # aux_head on this row tile: (tn, D) @ (D, Cpad) -> f32 on the MXU.
    y = jnp.dot(feat_ref[...], w_ref[...], preferred_element_type=jnp.float32)

    # One-hot gather of the adversarial logit at the precomputed argmax class.
    col = lax.broadcasted_iota(jnp.int32, y.shape, 1)            # (tn, Cpad)
    sel = (col == idx_ref[...]).astype(jnp.float32)              # (tn, Cpad)
    v = jnp.sum(sel * y, axis=1, keepdims=True) + bsel_ref[...]  # (tn, 1)

    if apply_phistar:            # pearson conjugate: phistar(v) = v^2/4 + v
        v = 0.25 * v * v + v

    # Select-style mask on the global row index handles ragged last tiles and
    # the clamped duplicate tiles of the megacore split.
    tile = c * tpc + i
    row = tile * tn + lax.broadcasted_iota(jnp.int32, (tn, 1), 0)
    acc_ref[...] += jnp.where(row < n_valid, v, 0.0)             # plain VPU add

    @pl.when(i == tpc - 1)
    def _():
        # Cross-sublane reduce only once per core slice, in the finalize.
        out_ref[0] = jnp.sum(acc_ref[...], axis=0, keepdims=True)


def _domain_partial_sum(features, idx, bsel, w_p, *, tn, apply_phistar,
                        num_cores, vmem_limit_bytes):
    """sum_rows f(feat @ W + b)[row, idx[row]] for one domain (no mean)."""
    n, d = features.shape
    cpad = w_p.shape[1]
    n_tiles = pl.cdiv(n, tn)
    tpc = pl.cdiv(n_tiles, num_cores)

    def row_map(c, i):
        # Clamp so num_cores * tpc >= n_tiles never issues an OOB block DMA;
        # clamped (duplicate) tiles are fully masked out in-kernel.
        return (jnp.minimum(c * tpc + i, n_tiles - 1), 0)

    kernel = functools.partial(_fdal_partial_kernel, tn=tn, n_valid=n,
                               apply_phistar=apply_phistar)

    cp_kwargs = dict(dimension_semantics=("parallel", "arbitrary"))
    if vmem_limit_bytes is not None:
        cp_kwargs["vmem_limit_bytes"] = int(vmem_limit_bytes)

    partial = pl.pallas_call(
        kernel,
        out_shape=jax.ShapeDtypeStruct((num_cores, 1, 1), jnp.float32),
        grid=(num_cores, tpc),
        in_specs=[
            pl.BlockSpec((tn, d), row_map),               # feature row tile
            pl.BlockSpec((tn, 1), row_map),               # argmax class index
            pl.BlockSpec((tn, 1), row_map),               # pre-gathered b[idx]
            pl.BlockSpec((d, cpad), lambda c, i: (0, 0)),  # W (VMEM-resident)
        ],
        out_specs=pl.BlockSpec((1, 1, 1), lambda c, i: (c, 0, 0)),
        scratch_shapes=[pltpu.VMEM((tn, 1), jnp.float32)],
        compiler_params=pltpu.CompilerParams(**cp_kwargs),
    )(features, idx, bsel, w_p)
    return jnp.sum(partial)


def fdal_divergence_head(features_s, features_t, pred_src, pred_trg, w, b, *,
                         gamma=1.0, reg_coef=1.0, block_rows=512,
                         compute_dtype=jnp.bfloat16, num_cores=1,
                         vmem_limit_bytes=None):
    """fDAL divergence loss (pearson).  w: (D, C), b: (C,) or (1, C).

    block_rows: row tile.  256-512 reaches the HBM roofline on v5e/v6e
    (128 MiB VMEM).  On v7x (64 MiB physical, 32 MiB default scoped VMEM) keep
    2*block_rows*D*2 B (features, double-buffered) + 2*D*128*2 B (resident W)
    well under the scoped limit, or raise it via vmem_limit_bytes.
    num_cores: set to 2 on v7x to split the row loop across both TensorCores.
    """
    ns, d = features_s.shape
    nt, d2 = features_t.shape
    assert d == d2, "source/target feature dims must match"
    c = w.shape[1]
    assert pred_src.shape == (ns, c) and pred_trg.shape == (nt, c)
    if ns == 0 or nt == 0:
        raise ValueError("fdal_divergence_head requires non-empty source and target batches")

    # aux_head weights, class axis zero-padded to 128 lanes (lane-dense MXU output).
    cpad = _round_up(c, 128)
    w_p = jnp.zeros((d, cpad), dtype=compute_dtype)
    w_p = w_p.at[:, :c].set(w.astype(compute_dtype))
    b_flat = jnp.reshape(b, (-1,)).astype(jnp.float32)

    # Wrapper-side argmax (first index on ties, like torch/np) + bias gather:
    # the kernel only sees 8 B/row of side data instead of a padded pred slab.
    idx_s = jnp.argmax(pred_src, axis=1).astype(jnp.int32)
    idx_t = jnp.argmax(pred_trg, axis=1).astype(jnp.int32)
    bsel_s = jnp.take(b_flat, idx_s)[:, None]
    bsel_t = jnp.take(b_flat, idx_t)[:, None]

    def _tn(n):
        return min(int(block_rows), max(8, _round_up(n, 8)))

    sum_vs = _domain_partial_sum(
        features_s.astype(compute_dtype), idx_s[:, None], bsel_s, w_p,
        tn=_tn(ns), apply_phistar=False, num_cores=int(num_cores),
        vmem_limit_bytes=vmem_limit_bytes)
    sum_pt = _domain_partial_sum(
        features_t.astype(compute_dtype), idx_t[:, None], bsel_t, w_p,
        tn=_tn(nt), apply_phistar=True, num_cores=int(num_cores),
        vmem_limit_bytes=vmem_limit_bytes)

    dst = float(gamma) * (sum_vs / jnp.float32(ns)) - (sum_pt / jnp.float32(nt))
    return float(reg_coef) * (-dst)


def _reference(features_s, features_t, pred_src, pred_trg, w, b,
               *, gamma=1.0, reg_coef=1.0, compute_dtype=jnp.float32):
    f = jnp.concatenate([features_s, features_t], axis=0).astype(compute_dtype)
    aux = jnp.dot(f, w.astype(compute_dtype),
                  preferred_element_type=jnp.float32) + jnp.reshape(b, (1, -1))
    ns = features_s.shape[0]
    y_s_adv, y_t_adv = aux[:ns], aux[ns:]
    v_s = jnp.take_along_axis(y_s_adv, jnp.argmax(pred_src, axis=1)[:, None], axis=1)[:, 0]
    v_t = jnp.take_along_axis(y_t_adv, jnp.argmax(pred_trg, axis=1)[:, None], axis=1)[:, 0]
    dst = gamma * jnp.mean(v_s) - jnp.mean(0.25 * v_t * v_t + v_t)
    return reg_coef * (-dst)


if __name__ == "__main__":
    # Small shapes: Ns=8, Nt=12 samples, hidden D=32, n_classes C=8.
    NS, NT, D, C = 8, 12, 32, 8
    key = jax.random.PRNGKey(0)
    k_fs, k_ft, k_ps, k_pt, k_w, k_b = jax.random.split(key, 6)

    features_s = jax.random.normal(k_fs, (NS, D), dtype=jnp.float32)
    features_t = jax.random.normal(k_ft, (NT, D), dtype=jnp.float32)
    pred_src = jax.random.normal(k_ps, (NS, C), dtype=jnp.float32)
    pred_trg = jax.random.normal(k_pt, (NT, C), dtype=jnp.float32)
    w = jax.random.normal(k_w, (D, C), dtype=jnp.float32) * 0.05
    b = jax.random.normal(k_b, (1, C), dtype=jnp.float32) * 0.01

    # f32 compute path: tight check against the mathematical reference.
    loss32 = jax.block_until_ready(
        fdal_divergence_head(features_s, features_t, pred_src, pred_trg, w, b,
                             gamma=1.0, reg_coef=1.0, compute_dtype=jnp.float32))
    ref32 = _reference(features_s, features_t, pred_src, pred_trg, w, b,
                       gamma=1.0, reg_coef=1.0, compute_dtype=jnp.float32)
    assert jnp.allclose(loss32, ref32, atol=1e-4, rtol=1e-4), (loss32, ref32)

    # bf16 MXU path (default): check against an identically-cast reference.
    loss16 = jax.block_until_ready(
        fdal_divergence_head(features_s, features_t, pred_src, pred_trg, w, b,
                             gamma=1.0, reg_coef=1.0, compute_dtype=jnp.bfloat16))
    ref16 = _reference(features_s, features_t, pred_src, pred_trg, w, b,
                       gamma=1.0, reg_coef=1.0, compute_dtype=jnp.bfloat16)
    assert jnp.allclose(loss16, ref16, atol=1e-3, rtol=1e-3), (loss16, ref16)

    print("KERNEL_OK")
</pallas_src>

<mosaic_0001>
module attributes {stable_mosaic.version = 11 : i64} {
  func.func @_fdal_partial_kernel(%arg0: i32, %arg1: i32, %arg2: memref<8x32xf32, #tpu.memory_space<vmem>>, %arg3: memref<8x1xi32, #tpu.memory_space<vmem>>, %arg4: memref<8x1xf32, #tpu.memory_space<vmem>>, %arg5: memref<32x128xf32, #tpu.memory_space<vmem>>, %arg6: memref<1x1x1xf32, #tpu.memory_space<vmem>>, %arg7: memref<8x1xf32, #tpu.memory_space<vmem>>) attributes {dimension_semantics = [#tpu.dimension_semantics<parallel>, #tpu.dimension_semantics<arbitrary>], iteration_bounds = array<i64: 1, 1>, scalar_prefetch = 0 : i64, scratch_operands = 1 : i64, tpu.core_type = #tpu.core_type<tc>, window_params = [{transform_indices = @transform_0, window_bounds = array<i64: 8, 32>}, {transform_indices = @transform_1, window_bounds = array<i64: 8, 1>}, {transform_indices = @transform_2, window_bounds = array<i64: 8, 1>}, {pipeline_mode = #tpu.pipeline_mode<synchronous>, transform_indices = @transform_3, window_bounds = array<i64: 32, 128>}, {transform_indices = @transform_4, window_bounds = array<i64: 1, 1, 1>}]} {
    %c0_i32 = arith.constant 0 : i32
    %0 = arith.cmpi eq, %arg1, %c0_i32 : i32
    %1 = arith.extui %0 : i1 to i32
    %c0_i32_0 = arith.constant 0 : i32
    %2 = arith.cmpi ne, %1, %c0_i32_0 : i32
    scf.if %2 {
      %cst_17 = arith.constant 0.000000e+00 : f32
      %33 = vector.broadcast %cst_17 : f32 to vector<8x1xf32>
      %c0_18 = arith.constant 0 : index
      %c0_19 = arith.constant 0 : index
      %34 = vector.load %arg7[%c0_18, %c0_19] : memref<8x1xf32, #tpu.memory_space<vmem>>, vector<8x1xf32>
      tpu.vector_store %arg7[%c0_18, %c0_19], %33 {strides = array<i32>} : memref<8x1xf32, #tpu.memory_space<vmem>>, vector<8x1xf32>,
    } else {
    }
    %c0 = arith.constant 0 : index
    %c0_1 = arith.constant 0 : index
    %3 = vector.load %arg2[%c0, %c0_1] : memref<8x32xf32, #tpu.memory_space<vmem>>, vector<8x32xf32>
    %c0_2 = arith.constant 0 : index
    %c0_3 = arith.constant 0 : index
    %4 = vector.load %arg5[%c0_2, %c0_3] : memref<32x128xf32, #tpu.memory_space<vmem>>, vector<32x128xf32>
    %cst = arith.constant dense<0.000000e+00> : vector<8x128xf32>
    %5 = tpu.matmul %3, %4, %cst {dimension_numbers = #tpu.dot_dimension_numbers<[1], [0], [0], [1], [0, 0, 1, 1], [], []>} : vector<8x32xf32>, vector<32x128xf32>, vector<8x128xf32> -> vector<8x128xf32>
    %6 = tpu.iota {dimensions = array<i32: 1>} : vector<8x128xi32>
    %c0_4 = arith.constant 0 : index
    %c0_5 = arith.constant 0 : index
    %7 = vector.load %arg3[%c0_4, %c0_5] : memref<8x1xi32, #tpu.memory_space<vmem>>, vector<8x1xi32>
    %8 = vector.broadcast %7 : vector<8x1xi32> to vector<8x128xi32>
    %9 = arith.cmpi eq, %6, %8 : vector<8x128xi32>
    %10 = arith.extui %9 : vector<8x128xi1> to vector<8x128xi32>
    %11 = arith.sitofp %10 : vector<8x128xi32> to vector<8x128xf32>
    %12 = arith.mulf %11, %5 : vector<8x128xf32>
    %cst_6 = arith.constant dense<0.000000e+00> : vector<8xf32>
    %13 = vector.multi_reduction <add>, %12, %cst_6 [1] : vector<8x128xf32> to vector<8xf32>
    %14 = vector.shape_cast %13 : vector<8xf32> to vector<8x1xf32>
    %c0_7 = arith.constant 0 : index
    %c0_8 = arith.constant 0 : index
    %15 = vector.load %arg4[%c0_7, %c0_8] : memref<8x1xf32, #tpu.memory_space<vmem>>, vector<8x1xf32>
    %16 = arith.addf %14, %15 : vector<8x1xf32>
    %c1_i32 = arith.constant 1 : i32
    %17 = arith.muli %arg0, %c1_i32 : i32
    %18 = arith.addi %17, %arg1 : i32
    %c8_i32 = arith.constant 8 : i32
    %19 = arith.muli %18, %c8_i32 : i32
    %20 = tpu.iota {dimensions = array<i32: 0>} : vector<8x1xi32>
    %21 = vector.broadcast %19 : i32 to vector<8x1xi32>
    %22 = arith.addi %21, %20 : vector<8x1xi32>
    %c0_9 = arith.constant 0 : index
    %c0_10 = arith.constant 0 : index
    %23 = vector.load %arg7[%c0_9, %c0_10] : memref<8x1xf32, #tpu.memory_space<vmem>>, vector<8x1xf32>
    %c8_i32_11 = arith.constant 8 : i32
    %24 = vector.broadcast %c8_i32_11 : i32 to vector<8x1xi32>
    %25 = arith.cmpi slt, %22, %24 : vector<8x1xi32>
    %cst_12 = arith.constant 0.000000e+00 : f32
    %26 = vector.broadcast %cst_12 : f32 to vector<8x1xf32>
    %27 = arith.select %25, %16, %26 : vector<8x1xi1>, vector<8x1xf32>
    %28 = arith.addf %23, %27 : vector<8x1xf32>
    %c0_13 = arith.constant 0 : index
    %c0_14 = arith.constant 0 : index
    %29 = vector.load %arg7[%c0_13, %c0_14] : memref<8x1xf32, #tpu.memory_space<vmem>>, vector<8x1xf32>
    tpu.vector_store %arg7[%c0_13, %c0_14], %28 {strides = array<i32>} : memref<8x1xf32, #tpu.memory_space<vmem>>, vector<8x1xf32>,
    %c0_i32_15 = arith.constant 0 : i32
    %30 = arith.cmpi eq, %arg1, %c0_i32_15 : i32
    %31 = arith.extui %30 : i1 to i32
    %c0_i32_16 = arith.constant 0 : i32
    %32 = arith.cmpi ne, %31, %c0_i32_16 : i32
    scf.if %32 {
      %c0_17 = arith.constant 0 : index
      %c0_18 = arith.constant 0 : index
      %33 = vector.load %arg7[%c0_17, %c0_18] : memref<8x1xf32, #tpu.memory_space<vmem>>, vector<8x1xf32>
      %cst_19 = arith.constant dense<0.000000e+00> : vector<1xf32>
      %34 = vector.multi_reduction <add>, %33, %cst_19 [0] : vector<8x1xf32> to vector<1xf32>
      %35 = vector.shape_cast %34 : vector<1xf32> to vector<1x1xf32>
      %c0_20 = arith.constant 0 : index
      %c0_21 = arith.constant 0 : index
      %c0_22 = arith.constant 0 : index
      %36 = vector.load %arg6[%c0_20, %c0_21, %c0_22] : memref<1x1x1xf32, #tpu.memory_space<vmem>>, vector<1x1x1xf32>
      %37 = vector.shape_cast %36 : vector<1x1x1xf32> to vector<1x1xf32>
      %38 = vector.shape_cast %35 : vector<1x1xf32> to vector<1x1x1xf32>
      tpu.vector_store %arg6[%c0_20, %c0_21, %c0_22], %38 {strides = array<i32>} : memref<1x1x1xf32, #tpu.memory_space<vmem>>, vector<1x1x1xf32>,
    } else {
    }
    return
  }
  func.func @transform_0(%arg0: i32, %arg1: i32) -> (i32, i32) {
    %c1_i32 = arith.constant 1 : i32
    %0 = arith.muli %arg0, %c1_i32 : i32
    %1 = arith.addi %0, %arg1 : i32
    %c0_i32 = arith.constant 0 : i32
    %2 = arith.minsi %1, %c0_i32 : i32
    %c0_i32_0 = arith.constant 0 : i32
    %c0_i32_1 = arith.constant 0 : i32
    return %2, %c0_i32_0 : i32, i32
  }
  func.func @transform_1(%arg0: i32, %arg1: i32) -> (i32, i32) {
    %c1_i32 = arith.constant 1 : i32
    %0 = arith.muli %arg0, %c1_i32 : i32
    %1 = arith.addi %0, %arg1 : i32
    %c0_i32 = arith.constant 0 : i32
    %2 = arith.minsi %1, %c0_i32 : i32
    %c0_i32_0 = arith.constant 0 : i32
    %c0_i32_1 = arith.constant 0 : i32
    return %2, %c0_i32_0 : i32, i32
  }
  func.func @transform_2(%arg0: i32, %arg1: i32) -> (i32, i32) {
    %c1_i32 = arith.constant 1 : i32
    %0 = arith.muli %arg0, %c1_i32 : i32
    %1 = arith.addi %0, %arg1 : i32
    %c0_i32 = arith.constant 0 : i32
    %2 = arith.minsi %1, %c0_i32 : i32
    %c0_i32_0 = arith.constant 0 : i32
    %c0_i32_1 = arith.constant 0 : i32
    return %2, %c0_i32_0 : i32, i32
  }
  func.func @transform_3(%arg0: i32, %arg1: i32) -> (i32, i32) {
    %c0_i32 = arith.constant 0 : i32
    %c0_i32_0 = arith.constant 0 : i32
    %c0_i32_1 = arith.constant 0 : i32
    return %c0_i32, %c0_i32_0 : i32, i32
  }
  func.func @transform_4(%arg0: i32, %arg1: i32) -> (i32, i32, i32) {
    %c0_i32 = arith.constant 0 : i32
    %c0_i32_0 = arith.constant 0 : i32
    %c0_i32_1 = arith.constant 0 : i32
    return %arg0, %c0_i32, %c0_i32_0 : i32, i32, i32
  }
}

</mosaic_0001>

<bundles_post_ra>
// kernel: tpu_custom_call.1
= control target key start
LH: loop header
LB: loop body
LE: loop exit
PB: predicated region body
PF: predicated region fallthrough
CT: control target
= control target key end

     0   :  { %9 = vsyncpa [#allocation4], 0  ;;  %s390_s0 = inlined_call_operand.vmem [shape: f32[8,32], index: 0, kind: input, shape index: {}]   ;;  %s391_s1 = inlined_call_operand.vmem [shape: s32[8,1], index: 1, kind: input, shape index: {}]   ;;  %s392_s2 = inlined_call_operand.vmem [shape: f32[8,1], index: 2, kind: input, shape index: {}]   ;;  %s393_s3 = inlined_call_operand.hbm [shape: f32[32,128], index: 3, kind: input, shape index: {}]   ;;  %s394_s4 = inlined_call_operand.hbm [shape: f32[1,1,1], index: 4, kind: output, shape index: {}]  }
   0x1   :  { %10 = vsyncpa [#allocation5], 0  ;;  %s340_s15 = smov [#allocation3]  }
   0x2   :  { %s52_s16 = sshll.u32 %s340_s15, 4  ;;  %s53_s16 = int_to_ptr.vmem [resolvable:$true] %s52_s16 }
   0x3   :  { %s304_s17 = scalar_lea.vmem %s53_s16, 512  ;;  %p309_p1 = scmp.lt.s32.totalorder %s53_s16, %s53_s16 }
   0x4   :  { %p305_p0 = scmp.ne.s32.totalorder %s53_s16, %s304_s17  ;;  %p310_p2 = scmp.lt.s32.totalorder %s304_s17, %s304_s17 }
   0x6   :  { %p311_p3 = por %p310_p2, %p309_p1 }
   0x8   :  { %p312_p4 = pnand %p311_p3, %p305_p0 }
   0xa   :  { %315 = shalt.err (!%p312_p4)
}
   0xb   :  { %s341_s18 = smov 128   ;;  %s342_s19 = smov 8  }
   0xc   :  { %58 = dma.hbm_to_vmem [thread:$0]  %s393_s3, 512, %s53_s16, [#allocation4], %s341_s18, %s341_s18, %s342_s19  }
   0xd   :  { %336 = dma.done.wait [#allocation4], 512  }
   0xe   :  { %337 = vsyncadd [#allocation4], 4294966784  ;;  %v343_v0 = vmov 0.0   ;;  %vm344_vm0 = vmmov 0   ;;  %v345_v1 = vmov 0   ;;  %v123_v2 = vld [vmem:[#allocation3 + $0x18] sm:$0xff]  ;;  %v198_v8 = vlaneseq }
   0xf   :  { %277 = vmatprep.subr.mxu0 %v343_v0  ;;  %285 = vmatprep.mubr.msk.f32.mxu0 %vm344_vm0, %v343_v0  ;;  %v122_v3 = vld [vmem:[#allocation3 + $0x10] sm:$0xff]  ;;  %v200_v4 = vld [vmem:[%s391_s1] sm:$0xff]  ;;  %v121_v5 = vld [vmem:[#allocation3 + $0x8] sm:$0xff]  ;;  %vm124_vm1 = vcmask 261120   ;;  %vm117_vm2 = vcmask 7168   ;;  %vm235_vm4 = vcmask 0  }
  0x10   :  { %295 = vset.pattern.permute.xlu0 %v345_v1  ;;  %278 = vmatpush3.msra.mxu0 %v123_v2  ;;  %v120_v6 = vld [vmem:[#allocation3] sm:$0xff]  ;;  %v119_v7 = vld [vmem:[%s390_s0] sm:$0xff]  ;;  %118 = vst.msk [vmem:[#allocation2] sm:$0xff] %vm117_vm2, %v343_v0  ;;  %v199_v9 = vand.u32 127, %v198_v8  ;;  %s346_s0 = smov [#allocation6]  }
  0x11   :  { %279 = vmatprep.subr.mxu0 %v343_v0  ;;  %202 = vperm.xlu0 %295, %v200_v4   ;;  %v210_v15 = vld [vmem:[%s392_s2] sm:$0xff]  ;;  %s243_s26 = sshll.u32 %s346_s0, 4  ;;  %s244_s26 = int_to_ptr.vmem [resolvable:$true] %s243_s26 }
  0x12   :  { %280 = vmatpush3.msra.mxu0 %v122_v3  ;;  %s316_s2 = scalar_lea.vmem %s244_s26, 16  ;;  %s320_s27 = scalar_lea.vmem %s244_s26, 32 }
  0x13   :  { %281 = vmatprep.subr.mxu0 %v343_v0  ;;  %p317_p5 = scmp.ne.s32.totalorder %s244_s26, %s316_s2  ;;  %p321_p6 = scmp.lt.s32.totalorder %s244_s26, %s244_s26 }
  0x14   :  { %282 = vmatpush3.msra.mxu0 %v121_v5  ;;  %p322_p7 = scmp.lt.s32.totalorder %s320_s27, %s316_s2 }
  0x15   :  { %283 = vmatprep.subr.mxu0 %v343_v0 }
  0x16   :  { %284 = vmatpush3.msra.mxu0 %v120_v6  ;;  %p323_p8 = por %p322_p7, %p321_p6 }
  0x17   :  { %286 = vmatmul.mubr.msk.f32.vlgmr.msra.gmra.mxu0 %vm124_vm1, %v119_v7  ;;  %v218_v17 = vld [vmem:[#allocation2] sm:$0xff] }
  0x18   :  { %p324_p9 = pnand %p323_p8, %p317_p5 }
  0x8c   :  { %v203_v10 = vpop.permute.xlu0 %202 }
  0x8d   :  { %vm204_vm3 = vcmp.eq.s32.totalorder %v199_v9, %v203_v10 }
  0x8e   :  { %v271_v11 = vsel %vm204_vm3, 1.0, %v343_v0 }
  0xd7   :  { %v194_v12 = vpop.f32.mrf.mxu0 }
  0xd8   :  { %v207_v13 = vmul.f32 %v271_v11, %v194_v12 }
  0xd9   :  { %v287_v14 = vpop.f32.mrf.mxu0 }
  0xda   :  { %208 = vadd.xlane.f32.xlu0 %v207_v13 }
 0x163   :  { %v209_v16 = vpop.xlane.xlu0 %208 }
 0x164   :  { %v211_v18 = vadd.f32 %v210_v15, %v209_v16 }
 0x166   :  { %v221_v19 = vadd.f32 %v218_v17, %v211_v18 }
 0x168   :  { %223 = vst.msk [vmem:[#allocation2] sm:$0xff] %vm117_vm2, %v221_v19 }
 0x16f   :  { %v227_v20 = vld [vmem:[#allocation2] sm:$0xff] }
 0x170   :  { %v228_v21 = vsel %vm117_vm2, %v227_v20, 0.0 }
 0x171   :  { %v229_v22 = vrot.slane %v228_v21, 4 }
 0x173   :  { %v230_v23 = vadd.f32 %v229_v22, %v228_v21 }
 0x175   :  { %v231_v24 = vrot.slane %v230_v23, 2 }
 0x177   :  { %v232_v25 = vadd.f32 %v231_v24, %v230_v23 }
 0x179   :  { %v233_v26 = vrot.slane %v232_v25, 1 }
 0x17b   :  { %v234_v27 = vadd.f32 %v233_v26, %v232_v25 }
 0x17d   :  { %236 = vst.msk [vmem:[#allocation6] sm:$0x1] %vm235_vm4, %v234_v27 }
 0x17e   :  { %327 = shalt.err (!%p324_p9)
}
 0x17f   :  { %246 = dma.vmem_to_hbm [thread:$0]  %s244_s26, 16, %s394_s4, [#allocation5]  }
 0x180   :  { %338 = dma.done.wait [#allocation5], 16  }
 0x181   :  { %339 = vsyncadd [#allocation5], 4294967280 }
 0x182   :  { %250 = vsyncpa [#allocation4], 1 }
 0x183   :  { %251 = vsyncpa [#allocation5], 1 }

</bundles_post_ra>
